<compile_context>
chip_gen: v7x
topology: tpu7x:2x2x1
jax: 0.10.0
libtpu: 0.0.40
codegen_flags: <defaults>
</compile_context>

<pallas_src>
import jax
import jax.numpy as jnp
from jax.experimental import pallas as pl
from jax.experimental.pallas import tpu as pltpu

_LANE = 128          # lane width: output/input rows stay lane-dense
_MAX_BLOCK_N = 2048  # max batch lanes per grid step (H * bn * 4B ~= 1 MiB at H=128)


def _mlp_kernel(x_ref, params_ref, b2_ref, o_ref):
    x = x_ref[...]                               # (1, bn)  batch on lanes
    w1 = params_ref[:, 0:1]                      # (H, 1)   static slices of packed params
    b1 = params_ref[:, 1:2]                      # (H, 1)
    w2 = params_ref[:, 2:3]                      # (H, 1)

    # Hidden layer: K=1 contraction == broadcast outer product (pure VPU).
    h = jnp.maximum(w1 * x + b1, 0.0)            # (H, bn)

    # Output layer: elementwise scale + cross-sublane reduction (XLU),
    # producing the lane-dense (1, bn) row directly (no masked stores).
    y = jnp.sum(w2 * h, axis=0, keepdims=True)   # (1, bn)

    o_ref[...] = (y + b2_ref[0]).astype(o_ref.dtype)


def math_regress_forward(x, w1, b1, w2, b2):
    """Pallas forward pass for Math_Regress.

    x  : (N, 1) float32
    w1 : (H, 1) float32   -- nn.Linear(1, H).weight
    b1 : (H,)   float32   -- nn.Linear(1, H).bias
    w2 : (1, H) float32   -- nn.Linear(H, 1).weight
    b2 : (1,)   float32   -- nn.Linear(H, 1).bias
    returns (N, 1) float32
    """
    n = x.shape[0]
    hidden = w1.shape[0]

    # Lane-dense batch layout: pad N to a multiple of the lane-block size.
    n_lane = pl.cdiv(n, _LANE) * _LANE
    block_n = min(n_lane, _MAX_BLOCK_N)
    n_pad = pl.cdiv(n_lane, block_n) * block_n
    grid_n = n_pad // block_n

    # Batch on lanes: (N, 1) -> (1, N) -> zero-pad to (1, N_pad).
    x_lanes = jnp.pad(x.reshape(1, n).astype(jnp.float32), ((0, 0), (0, n_pad - n)))

    # One coalesced, grid-invariant parameter DMA: columns = [w1, b1, w2].
    params = jnp.stack(
        [
            w1.reshape(hidden).astype(jnp.float32),
            b1.reshape(hidden).astype(jnp.float32),
            w2.reshape(hidden).astype(jnp.float32),
        ],
        axis=1,
    )                                            # (H, 3)
    b2_smem = b2.reshape((1,)).astype(jnp.float32)

    out = pl.pallas_call(
        _mlp_kernel,
        out_shape=jax.ShapeDtypeStruct((1, n_pad), jnp.float32),
        grid_spec=pltpu.PrefetchScalarGridSpec(
            num_scalar_prefetch=0,
            grid=(grid_n,),
            in_specs=[
                pl.BlockSpec((1, block_n), lambda i: (0, i)),          # x lane block
                pl.BlockSpec((hidden, 3), lambda i: (0, 0)),           # packed params (resident)
                pl.BlockSpec(memory_space=pltpu.MemorySpace.SMEM),     # b2 scalar
            ],
            out_specs=pl.BlockSpec((1, block_n), lambda i: (0, i)),
        ),
        compiler_params=pltpu.CompilerParams(
            dimension_semantics=("parallel",),
        ),
    )(x_lanes, params, b2_smem)

    # Undo the TPU-friendly layout: (1, N_pad) -> (N, 1).
    return out[0, :n][:, None]


def init_params(key, num_hidden=128):
    """Deterministic init mimicking PyTorch nn.Linear default (uniform +/- 1/sqrt(fan_in)),
    in native PyTorch weight layouts."""
    k1, k2, k3, k4 = jax.random.split(key, 4)
    bound1 = 1.0 / jnp.sqrt(1.0)                    # fan_in = 1
    bound2 = 1.0 / jnp.sqrt(float(num_hidden))      # fan_in = H
    w1 = jax.random.uniform(k1, (num_hidden, 1), jnp.float32, -bound1, bound1)
    b1 = jax.random.uniform(k2, (num_hidden,), jnp.float32, -bound1, bound1)
    w2 = jax.random.uniform(k3, (1, num_hidden), jnp.float32, -bound2, bound2)
    b2 = jax.random.uniform(k4, (1,), jnp.float32, -bound2, bound2)
    return w1, b1, w2, b2


if __name__ == "__main__":
    num_of_rows = 300
    num_hidden = 128

    key = jax.random.PRNGKey(0)
    w1, b1, w2, b2 = init_params(key, num_hidden)

    # x = torch.unsqueeze(torch.linspace(-1, 1, num_of_rows), dim=1)  -> (N, 1)
    x = jnp.linspace(-1.0, 1.0, num_of_rows, dtype=jnp.float32)[:, None]

    out = math_regress_forward(x, w1, b1, w2, b2)
    out = jax.block_until_ready(out)

    # Pure-JAX reference (full-precision dots) for the correctness check.
    hi = jnp.maximum(
        jnp.dot(x, w1.T, precision=jax.lax.Precision.HIGHEST) + b1, 0.0
    )
    ref = jnp.dot(hi, w2.T, precision=jax.lax.Precision.HIGHEST) + b2

    assert out.shape == (num_of_rows, 1)
    assert jnp.allclose(out, ref, atol=1e-5, rtol=1e-5)

    print("KERNEL_OK")
</pallas_src>

<mosaic_0001>
module attributes {stable_mosaic.version = 11 : i64} {
  func.func @_mlp_kernel(%arg0: i32, %arg1: memref<1x384xf32, #tpu.memory_space<vmem>>, %arg2: memref<128x3xf32, #tpu.memory_space<vmem>>, %arg3: memref<1xf32, #tpu.memory_space<smem>>, %arg4: memref<1x384xf32, #tpu.memory_space<vmem>>) attributes {dimension_semantics = [#tpu.dimension_semantics<parallel>], iteration_bounds = array<i64: 1>, scalar_prefetch = 0 : i64, scratch_operands = 0 : i64, tpu.core_type = #tpu.core_type<tc>, window_params = [{transform_indices = @transform_0, window_bounds = array<i64: 1, 384>}, {pipeline_mode = #tpu.pipeline_mode<synchronous>, transform_indices = @transform_1, window_bounds = array<i64: 128, 3>}, {transform_indices = @transform_2, window_bounds = array<i64: 1>}, {transform_indices = @transform_3, window_bounds = array<i64: 1, 384>}]} {
    %c0 = arith.constant 0 : index
    %c0_0 = arith.constant 0 : index
    %0 = vector.load %arg1[%c0, %c0_0] : memref<1x384xf32, #tpu.memory_space<vmem>>, vector<1x384xf32>
    %c0_1 = arith.constant 0 : index
    %c0_2 = arith.constant 0 : index
    %1 = vector.load %arg2[%c0_1, %c0_2] : memref<128x3xf32, #tpu.memory_space<vmem>>, vector<128x1xf32>
    %c0_3 = arith.constant 0 : index
    %c1 = arith.constant 1 : index
    %2 = vector.load %arg2[%c0_3, %c1] : memref<128x3xf32, #tpu.memory_space<vmem>>, vector<128x1xf32>
    %c0_4 = arith.constant 0 : index
    %c2 = arith.constant 2 : index
    %3 = vector.load %arg2[%c0_4, %c2] : memref<128x3xf32, #tpu.memory_space<vmem>>, vector<128x1xf32>
    %4 = vector.broadcast %1 : vector<128x1xf32> to vector<128x384xf32>
    %5 = vector.broadcast %0 : vector<1x384xf32> to vector<128x384xf32>
    %6 = arith.mulf %4, %5 : vector<128x384xf32>
    %7 = vector.broadcast %2 : vector<128x1xf32> to vector<128x384xf32>
    %8 = arith.addf %6, %7 : vector<128x384xf32>
    %cst = arith.constant 0.000000e+00 : f32
    %9 = vector.broadcast %cst : f32 to vector<128x384xf32>
    %10 = arith.maximumf %8, %9 : vector<128x384xf32>
    %11 = vector.broadcast %3 : vector<128x1xf32> to vector<128x384xf32>
    %12 = arith.mulf %11, %10 : vector<128x384xf32>
    %cst_5 = arith.constant dense<0.000000e+00> : vector<384xf32>
    %13 = vector.multi_reduction <add>, %12, %cst_5 [0] : vector<128x384xf32> to vector<384xf32>
    %14 = vector.shape_cast %13 : vector<384xf32> to vector<1x384xf32>
    %c0_6 = arith.constant 0 : index
    %15 = memref.load %arg3[%c0_6] : memref<1xf32, #tpu.memory_space<smem>>
    %16 = vector.broadcast %15 : f32 to vector<1x384xf32>
    %17 = arith.addf %14, %16 : vector<1x384xf32>
    %c0_7 = arith.constant 0 : index
    %c0_8 = arith.constant 0 : index
    %18 = vector.load %arg4[%c0_7, %c0_8] : memref<1x384xf32, #tpu.memory_space<vmem>>, vector<1x384xf32>
    tpu.vector_store %arg4[%c0_7, %c0_8], %17 {strides = array<i32>} : memref<1x384xf32, #tpu.memory_space<vmem>>, vector<1x384xf32>,
    return
  }
  func.func @transform_0(%arg0: i32) -> (i32, i32) {
    %c0_i32 = arith.constant 0 : i32
    %c0_i32_0 = arith.constant 0 : i32
    return %c0_i32, %arg0 : i32, i32
  }
  func.func @transform_1(%arg0: i32) -> (i32, i32) {
    %c0_i32 = arith.constant 0 : i32
    %c0_i32_0 = arith.constant 0 : i32
    %c0_i32_1 = arith.constant 0 : i32
    return %c0_i32, %c0_i32_0 : i32, i32
  }
  func.func @transform_2(%arg0: i32) -> i32 {
    %c0_i32 = arith.constant 0 : i32
    %c0_i32_0 = arith.constant 0 : i32
    return %c0_i32 : i32
  }
  func.func @transform_3(%arg0: i32) -> (i32, i32) {
    %c0_i32 = arith.constant 0 : i32
    %c0_i32_0 = arith.constant 0 : i32
    return %c0_i32, %arg0 : i32, i32
  }
}

</mosaic_0001>

<bundles_post_ra>
// kernel: tpu_custom_call.1
= control target key start
LH: loop header
LB: loop body
LE: loop exit
PB: predicated region body
PF: predicated region fallthrough
CT: control target
= control target key end

     0   :  { %v609_v2 = vmov 0   ;;  %s837_s0 = inlined_call_operand.vmem [shape: f32[1,384], index: 0, kind: input, shape index: {}]   ;;  %s838_s1 = inlined_call_operand.vmem [shape: f32[128,3], index: 1, kind: input, shape index: {}]   ;;  %s839_s2 = inlined_call_operand.<no memory space> [shape: f32[1], index: 2, kind: input, shape index: {}]   ;;  %s840_s3 = inlined_call_operand.hbm [shape: f32[1,384], index: 3, kind: output, shape index: {}]  }
   0x1   :  { %v19_v0 = vld [vmem:[%s838_s1 + $0x10] sm:$0xff]  ;;  %v17_v1 = vld [vmem:[%s838_s1] sm:$0xff]  ;;  %569 = vset.pattern.permute.xlu1 %v609_v2  ;;  %568 = vset.pattern.permute.xlu0 %v609_v2  ;;  %v20_v3 = vld [vmem:[%s838_s1 + $0x18] sm:$0xff] }
   0x2   :  { %45 = vperm.xlu1 %569, %v19_v0   ;;  %35 = vperm.xlu0 %568, %v17_v1   ;;  %v18_v4 = vld [vmem:[%s838_s1 + $0x8] sm:$0xff] }
   0x3   :  { %9 = vsyncpa [#allocation4], 0  ;;  %v22_v5 = vld [vmem:[%s838_s1 + $0x28] sm:$0xff]  ;;  %v21_v6 = vld [vmem:[%s838_s1 + $0x20] sm:$0xff]  ;;  %v610_v17 = vmov 1   ;;  %v611_v18 = vmov 2   ;;  %v114_v33 = vlaneseq }
   0x4   :  { %v24_v7 = vld [vmem:[%s838_s1 + $0x38] sm:$0xff]  ;;  %v23_v8 = vld [vmem:[%s838_s1 + $0x30] sm:$0xff]  ;;  %v26_v9 = vld [vmem:[%s838_s1 + $0x48] sm:$0xff]  ;;  %s613_s19 = smov [#allocation3]  }
   0x5   :  { %v25_v10 = vld [vmem:[%s838_s1 + $0x40] sm:$0xff]  ;;  %v28_v11 = vld [vmem:[%s838_s1 + $0x58] sm:$0xff]  ;;  %v27_v12 = vld [vmem:[%s838_s1 + $0x50] sm:$0xff]  ;;  %v707_v36 = vshrl.u32 %v114_v33, 7  ;;  %s555_s20 = sshll.u32 %s613_s19, 4  ;;  %vm546_vm0 = vcmp.lt.s32.totalorder %v114_v33, 384  ;;  %s556_s20 = int_to_ptr.vmem [resolvable:$true] %s555_s20 }
   0x6   :  { %50 = vperm.xlu1 %569, %v20_v3   ;;  %40 = vperm.xlu0 %568, %v18_v4   ;;  %v30_v13 = vld [vmem:[%s838_s1 + $0x68] sm:$0xff]  ;;  %v29_v14 = vld [vmem:[%s838_s1 + $0x60] sm:$0xff]  ;;  %v32_v15 = vld [vmem:[%s838_s1 + $0x78] sm:$0xff]  ;;  %s589_s21 = scalar_lea.vmem %s556_s20, 64  ;;  %p590_p1 = scmp.lt.s32.totalorder %s556_s20, %s556_s20 }
   0x7   :  { %v31_v16 = vld [vmem:[%s838_s1 + $0x70] sm:$0xff]  ;;  %v116_v39 = vsub.s32 0, %v707_v36  ;;  %v120_v40 = vsub.s32 1, %v707_v36  ;;  %v16_v41 = vld [vmem:[%s837_s0] sm:$0x7]  ;;  %v124_v42 = vsub.s32 2, %v707_v36 }
   0x9   :  { %v717_v45 = vrot.slane %v16_v41, %v116_v39  ;;  %v719_v46 = vrot.slane %v16_v41, %v120_v40  ;;  %v721_v47 = vrot.slane %v16_v41, %v124_v42 }
   0xa   :  { %60 = vperm.xlu1 %569, %v22_v5   ;;  %55 = vperm.xlu0 %568, %v21_v6  }
   0xe   :  { %70 = vperm.xlu1 %569, %v24_v7   ;;  %65 = vperm.xlu0 %568, %v23_v8  }
  0x12   :  { %80 = vperm.xlu1 %569, %v26_v9   ;;  %75 = vperm.xlu0 %568, %v25_v10  }
  0x16   :  { %90 = vperm.xlu1 %569, %v28_v11   ;;  %85 = vperm.xlu0 %568, %v27_v12  }
  0x1a   :  { %100 = vperm.xlu1 %569, %v30_v13   ;;  %95 = vperm.xlu0 %568, %v29_v14  }
  0x1e   :  { %110 = vperm.xlu1 %569, %v32_v15   ;;  %105 = vperm.xlu0 %568, %v31_v16  }
  0x22   :  { %570 = vset.pattern.permute.xlu1 %v610_v17  ;;  %572 = vset.pattern.permute.xlu0 %v611_v18 }
  0x23   :  { %182 = vperm.xlu1 %570, %v18_v4   ;;  %342 = vperm.xlu0 %572, %v18_v4  }
  0x27   :  { %186 = vperm.xlu1 %570, %v19_v0   ;;  %354 = vperm.xlu0 %572, %v21_v6  }
  0x2b   :  { %571 = vset.pattern.permute.xlu1 %v611_v18  ;;  %366 = vperm.xlu0 %572, %v24_v7  }
  0x2c   :  { %338 = vperm.xlu1 %571, %v17_v1  }
  0x2f   :  { %378 = vperm.xlu0 %572, %v27_v12  }
  0x30   :  { %573 = vset.pattern.permute.xlu1 %v610_v17 }
  0x31   :  { %194 = vperm.xlu1 %573, %v21_v6  }
  0x33   :  { %580 = vset.pattern.permute.xlu0 %v610_v17 }
  0x34   :  { %178 = vperm.xlu0 %580, %v17_v1  }
  0x35   :  { %574 = vset.pattern.permute.xlu1 %v611_v18 }
  0x36   :  { %346 = vperm.xlu1 %574, %v19_v0  }
  0x38   :  { %190 = vperm.xlu0 %580, %v20_v3  }
  0x3a   :  { %350 = vperm.xlu1 %574, %v20_v3  }
  0x3c   :  { %198 = vperm.xlu0 %580, %v22_v5  }
  0x3e   :  { %575 = vset.pattern.permute.xlu1 %v610_v17 }
  0x3f   :  { %202 = vperm.xlu1 %575, %v23_v8  }
  0x40   :  { %210 = vperm.xlu0 %580, %v25_v10  }
  0x43   :  { %206 = vperm.xlu1 %575, %v24_v7  }
  0x44   :  { %222 = vperm.xlu0 %580, %v28_v11  }
  0x47   :  { %576 = vset.pattern.permute.xlu1 %v611_v18 }
  0x48   :  { %358 = vperm.xlu1 %576, %v22_v5   ;;  %234 = vperm.xlu0 %580, %v31_v16  }
  0x4c   :  { %362 = vperm.xlu1 %576, %v23_v8   ;;  %583 = vset.pattern.permute.xlu0 %v611_v18 }
  0x4d   :  { %390 = vperm.xlu0 %583, %v30_v13  }
  0x50   :  { %577 = vset.pattern.permute.xlu1 %v610_v17 }
  0x51   :  { %214 = vperm.xlu1 %577, %v26_v9  }
  0x55   :  { %218 = vperm.xlu1 %577, %v27_v12  }
  0x59   :  { %578 = vset.pattern.permute.xlu1 %v611_v18 }
  0x5a   :  { %370 = vperm.xlu1 %578, %v25_v10  }
  0x5e   :  { %374 = vperm.xlu1 %578, %v26_v9  }
  0x62   :  { %579 = vset.pattern.permute.xlu1 %v610_v17 }
  0x63   :  { %226 = vperm.xlu1 %579, %v29_v14  }
  0x67   :  { %230 = vperm.xlu1 %579, %v30_v13  }
  0x6b   :  { %581 = vset.pattern.permute.xlu1 %v611_v18 }
  0x6c   :  { %382 = vperm.xlu1 %581, %v28_v11  }
  0x70   :  { %386 = vperm.xlu1 %581, %v29_v14  }
  0x74   :  { %582 = vset.pattern.permute.xlu1 %v610_v17 }
  0x75   :  { %238 = vperm.xlu1 %582, %v32_v15  }
  0x79   :  { %584 = vset.pattern.permute.xlu1 %v611_v18 }
  0x7a   :  { %394 = vperm.xlu1 %584, %v31_v16  }
  0x7e   :  { %398 = vperm.xlu1 %584, %v32_v15  }
  0x81   :  { %v46_v19 = vpop.permute.xlu1 %45  ;;  %v36_v20 = vpop.permute.xlu0 %35 }
  0x82   :  { %v135_v56 = vmul.f32 %v717_v45, %v46_v19  ;;  %v136_v59 = vmul.f32 %v719_v46, %v46_v19  ;;  %v137_v60 = vmul.f32 %v721_v47, %v46_v19  ;;  %v129_v63 = vmul.f32 %v717_v45, %v36_v20 }
  0x83   :  { %v130_v0 = vmul.f32 %v719_v46, %v36_v20  ;;  %v131_v1 = vmul.f32 %v721_v47, %v36_v20 }
  0x85   :  { %v51_v21 = vpop.permute.xlu1 %50  ;;  %v41_v22 = vpop.permute.xlu0 %40 }
  0x86   :  { %v132_v48 = vmul.f32 %v717_v45, %v41_v22  ;;  %v133_v49 = vmul.f32 %v719_v46, %v41_v22  ;;  %v134_v51 = vmul.f32 %v721_v47, %v41_v22  ;;  %v138_v3 = vmul.f32 %v717_v45, %v51_v21 }
  0x87   :  { %v139_v8 = vmul.f32 %v719_v46, %v51_v21  ;;  %v140_v12 = vmul.f32 %v721_v47, %v51_v21 }
  0x89   :  { %v682_v23 = vpop.permute.xlu1 %60  ;;  %v684_v24 = vpop.permute.xlu0 %55 }
  0x8a   :  { %v141_v13 = vmul.f32 %v717_v45, %v684_v24 }
  0x8d   :  { %v686_v25 = vpop.permute.xlu1 %70  ;;  %v688_v26 = vpop.permute.xlu0 %65 }
  0x91   :  { %v690_v27 = vpop.permute.xlu1 %80  ;;  %v692_v28 = vpop.permute.xlu0 %75 }
  0x95   :  { %v694_v29 = vpop.permute.xlu1 %90  ;;  %v696_v30 = vpop.permute.xlu0 %85 }
  0x99   :  { %v698_v31 = vpop.permute.xlu1 %100  ;;  %v700_v32 = vpop.permute.xlu0 %95 }
  0x9d   :  { %v702_v34 = vpop.permute.xlu1 %110  ;;  %v704_v35 = vpop.permute.xlu0 %105 }
  0xa2   :  { %v183_v37 = vpop.permute.xlu1 %182  ;;  %v343_v38 = vpop.permute.xlu0 %342 }
  0xa3   :  { %v244_v53 = vadd.f32 %v183_v37, %v132_v48  ;;  %v245_v54 = vadd.f32 %v183_v37, %v133_v49  ;;  %v246_v57 = vadd.f32 %v183_v37, %v134_v51 }
  0xa5   :  { %v292_v61 = vmax.f32 %v244_v53, 0.0  ;;  %v293_v2 = vmax.f32 %v245_v54, 0.0  ;;  %v294_v4 = vmax.f32 %v246_v57, 0.0 }
  0xa6   :  { %v187_v43 = vpop.permute.xlu1 %186  ;;  %v715_v44 = vpop.permute.xlu0 %354 }
  0xa7   :  { %v247_v62 = vadd.f32 %v187_v43, %v135_v56  ;;  %v248_v5 = vadd.f32 %v187_v43, %v136_v59  ;;  %v249_v6 = vadd.f32 %v187_v43, %v137_v60  ;;  %v404_v14 = vmul.f32 %v343_v38, %v292_v61 }
  0xa8   :  { %v405_v17 = vmul.f32 %v343_v38, %v293_v2  ;;  %v406_v22 = vmul.f32 %v343_v38, %v294_v4  ;;  %v142_v38 = vmul.f32 %v719_v46, %v684_v24 }
  0xa9   :  { %v295_v15 = vmax.f32 %v247_v62, 0.0  ;;  %v296_v37 = vmax.f32 %v248_v5, 0.0  ;;  %v297_v39 = vmax.f32 %v249_v6, 0.0  ;;  %v143_v62 = vmul.f32 %v721_v47, %v684_v24 }
  0xaa   :  { %v725_v50 = vpop.permute.xlu0 %366  ;;  %v145_v24 = vmul.f32 %v719_v46, %v682_v23 }
  0xab   :  { %v339_v52 = vpop.permute.xlu1 %338 }
  0xae   :  { %v728_v55 = vpop.permute.xlu0 %378 }
  0xb0   :  { %v195_v58 = vpop.permute.xlu1 %194 }
  0xb1   :  { %v253_v4 = vadd.f32 %v195_v58, %v141_v13  ;;  %v254_v5 = vadd.f32 %v195_v58, %v142_v38  ;;  %v147_v13 = vmul.f32 %v717_v45, %v688_v26 }
  0xb3   :  { %v179_v7 = vpop.permute.xlu0 %178 }
  0xb4   :  { %v241_v9 = vadd.f32 %v179_v7, %v129_v63  ;;  %v242_v10 = vadd.f32 %v179_v7, %v130_v0  ;;  %v243_v11 = vadd.f32 %v179_v7, %v131_v1 }
  0xb5   :  { %v347_v16 = vpop.permute.xlu1 %346 }
  0xb6   :  { %v289_v18 = vmax.f32 %v241_v9, 0.0  ;;  %v290_v19 = vmax.f32 %v242_v10, 0.0  ;;  %v291_v20 = vmax.f32 %v243_v11, 0.0  ;;  %v407_v40 = vmul.f32 %v347_v16, %v295_v15 }
  0xb7   :  { %v191_v41 = vpop.permute.xlu0 %190  ;;  %v408_v21 = vmul.f32 %v347_v16, %v296_v37  ;;  %v409_v51 = vmul.f32 %v347_v16, %v297_v39  ;;  %v255_v10 = vadd.f32 %v195_v58, %v143_v62  ;;  %v144_v15 = vmul.f32 %v717_v45, %v682_v23 }
  0xb8   :  { %v401_v42 = vmul.f32 %v339_v52, %v289_v18  ;;  %v402_v43 = vmul.f32 %v339_v52, %v290_v19  ;;  %v403_v48 = vmul.f32 %v339_v52, %v291_v20  ;;  %v250_v49 = vadd.f32 %v191_v41, %v138_v3 }
  0xb9   :  { %v251_v53 = vadd.f32 %v191_v41, %v139_v8  ;;  %v252_v54 = vadd.f32 %v191_v41, %v140_v12  ;;  %v351_v56 = vpop.permute.xlu1 %350  ;;  %v146_v16 = vmul.f32 %v721_v47, %v682_v23  ;;  %v302_v18 = vmax.f32 %v254_v5, 0.0 }
  0xba   :  { %v449_v57 = vadd.f32 %v404_v14, %v401_v42  ;;  %v470_v59 = vadd.f32 %v405_v17, %v402_v43  ;;  %v491_v60 = vadd.f32 %v406_v22, %v403_v48  ;;  %v298_v61 = vmax.f32 %v250_v49, 0.0 }
  0xbb   :  { %v299_v63 = vmax.f32 %v251_v53, 0.0  ;;  %v300_v0 = vmax.f32 %v252_v54, 0.0  ;;  %v199_v14 = vpop.permute.xlu0 %198  ;;  %v301_v17 = vmax.f32 %v253_v4, 0.0  ;;  %v150_v58 = vmul.f32 %v717_v45, %v686_v25 }
  0xbc   :  { %v450_v1 = vadd.f32 %v449_v57, %v407_v40  ;;  %v471_v52 = vadd.f32 %v470_v59, %v408_v21  ;;  %v492_v2 = vadd.f32 %v491_v60, %v409_v51  ;;  %v410_v3 = vmul.f32 %v351_v56, %v298_v61 }
  0xbd   :  { %v411_v6 = vmul.f32 %v351_v56, %v299_v63  ;;  %v412_v7 = vmul.f32 %v351_v56, %v300_v0  ;;  %v148_v19 = vmul.f32 %v719_v46, %v688_v26  ;;  %v256_v20 = vadd.f32 %v199_v14, %v144_v15 }
  0xbe   :  { %v451_v8 = vadd.f32 %v450_v1, %v410_v3  ;;  %v203_v9 = vpop.permute.xlu1 %202  ;;  %v257_v22 = vadd.f32 %v199_v14, %v145_v24  ;;  %v151_v39 = vmul.f32 %v719_v46, %v686_v25  ;;  %v303_v40 = vmax.f32 %v255_v10, 0.0 }
  0xbf   :  { %v472_v11 = vadd.f32 %v471_v52, %v411_v6  ;;  %v493_v12 = vadd.f32 %v492_v2, %v412_v7  ;;  %v258_v41 = vadd.f32 %v199_v14, %v146_v16  ;;  %v259_v23 = vadd.f32 %v203_v9, %v147_v13 }
  0xc0   :  { %v152_v42 = vmul.f32 %v721_v47, %v686_v25  ;;  %v149_v43 = vmul.f32 %v721_v47, %v688_v26  ;;  %v260_v48 = vadd.f32 %v203_v9, %v148_v19  ;;  %v413_v49 = vmul.f32 %v715_v44, %v301_v17 }
  0xc1   :  { %v414_v21 = vmul.f32 %v715_v44, %v302_v18  ;;  %v304_v54 = vmax.f32 %v256_v20, 0.0  ;;  %v305_v56 = vmax.f32 %v257_v22, 0.0  ;;  %v415_v60 = vmul.f32 %v715_v44, %v303_v40 }
  0xc2   :  { %v207_v37 = vpop.permute.xlu1 %206  ;;  %v261_v57 = vadd.f32 %v203_v9, %v149_v43  ;;  %v306_v61 = vmax.f32 %v258_v41, 0.0  ;;  %v307_v38 = vmax.f32 %v259_v23, 0.0  ;;  %v452_v25 = vadd.f32 %v451_v8, %v413_v49 }
  0xc3   :  { %v262_v51 = vadd.f32 %v207_v37, %v150_v58  ;;  %v263_v53 = vadd.f32 %v207_v37, %v151_v39  ;;  %v264_v59 = vadd.f32 %v207_v37, %v152_v42  ;;  %v308_v63 = vmax.f32 %v260_v48, 0.0  ;;  %v211_v58 = vpop.permute.xlu0 %210 }
  0xc4   :  { %v473_v1 = vadd.f32 %v472_v11, %v414_v21  ;;  %v494_v4 = vadd.f32 %v493_v12, %v415_v60  ;;  %v309_v5 = vmax.f32 %v261_v57, 0.0  ;;  %v153_v37 = vmul.f32 %v717_v45, %v692_v28 }
  0xc5   :  { %v310_v52 = vmax.f32 %v262_v51, 0.0  ;;  %v311_v2 = vmax.f32 %v263_v53, 0.0  ;;  %v312_v6 = vmax.f32 %v264_v59, 0.0  ;;  %v154_v39 = vmul.f32 %v719_v46, %v692_v28 }
  0xc6   :  { %v155_v40 = vmul.f32 %v721_v47, %v692_v28  ;;  %v265_v41 = vadd.f32 %v211_v58, %v153_v37  ;;  %v156_v43 = vmul.f32 %v717_v45, %v690_v27  ;;  %v157_v48 = vmul.f32 %v719_v46, %v690_v27 }
  0xc7   :  { %v359_v62 = vpop.permute.xlu1 %358  ;;  %v422_v16 = vmul.f32 %v725_v50, %v310_v52  ;;  %v423_v8 = vmul.f32 %v725_v50, %v311_v2  ;;  %v424_v13 = vmul.f32 %v725_v50, %v312_v6  ;;  %v266_v23 = vadd.f32 %v211_v58, %v154_v39 }
  0xc8   :  { %v416_v0 = vmul.f32 %v359_v62, %v304_v54  ;;  %v417_v26 = vmul.f32 %v359_v62, %v305_v56  ;;  %v418_v3 = vmul.f32 %v359_v62, %v306_v61  ;;  %v267_v50 = vadd.f32 %v211_v58, %v155_v40 }
  0xc9   :  { %v158_v49 = vmul.f32 %v721_v47, %v690_v27  ;;  %v313_v21 = vmax.f32 %v265_v41, 0.0  ;;  %v314_v51 = vmax.f32 %v266_v23, 0.0  ;;  %v161_v27 = vmul.f32 %v721_v47, %v696_v30 }
  0xca   :  { %v453_v7 = vadd.f32 %v452_v25, %v416_v0  ;;  %v474_v10 = vadd.f32 %v473_v1, %v417_v26  ;;  %v495_v9 = vadd.f32 %v494_v4, %v418_v3  ;;  %v315_v53 = vmax.f32 %v267_v50, 0.0 }
  0xcb   :  { %v363_v14 = vpop.permute.xlu1 %362  ;;  %v160_v0 = vmul.f32 %v719_v46, %v696_v30  ;;  %v165_v58 = vmul.f32 %v717_v45, %v700_v32  ;;  %v169_v37 = vmul.f32 %v719_v46, %v698_v31  ;;  %v170_v39 = vmul.f32 %v721_v47, %v698_v31 }
  0xcc   :  { %v419_v15 = vmul.f32 %v363_v14, %v307_v38  ;;  %v420_v44 = vmul.f32 %v363_v14, %v308_v63  ;;  %v421_v24 = vmul.f32 %v363_v14, %v309_v5  ;;  %v159_v38 = vmul.f32 %v717_v45, %v696_v30 }
  0xcd   :  { %v163_v30 = vmul.f32 %v719_v46, %v694_v29  ;;  %v167_v40 = vmul.f32 %v721_v47, %v700_v32 }
  0xce   :  { %v454_v11 = vadd.f32 %v453_v7, %v419_v15  ;;  %v475_v17 = vadd.f32 %v474_v10, %v420_v44  ;;  %v496_v18 = vadd.f32 %v495_v9, %v421_v24  ;;  %v162_v24 = vmul.f32 %v717_v45, %v694_v29 }
  0xd0   :  { %v215_v12 = vpop.permute.xlu1 %214  ;;  %v455_v19 = vadd.f32 %v454_v11, %v422_v16  ;;  %v476_v20 = vadd.f32 %v475_v17, %v423_v8  ;;  %v497_v22 = vadd.f32 %v496_v18, %v424_v13  ;;  %v223_v16 = vpop.permute.xlu0 %222  ;;  %v164_v8 = vmul.f32 %v721_v47, %v694_v29 }
  0xd1   :  { %v268_v54 = vadd.f32 %v215_v12, %v156_v43  ;;  %v269_v56 = vadd.f32 %v215_v12, %v157_v48  ;;  %v270_v57 = vadd.f32 %v215_v12, %v158_v49  ;;  %v168_v18 = vmul.f32 %v717_v45, %v698_v31 }
  0xd2   :  { %v274_v12 = vadd.f32 %v223_v16, %v162_v24  ;;  %v166_v29 = vmul.f32 %v719_v46, %v700_v32 }
  0xd3   :  { %v316_v62 = vmax.f32 %v268_v54, 0.0  ;;  %v317_v25 = vmax.f32 %v269_v56, 0.0  ;;  %v318_v63 = vmax.f32 %v270_v57, 0.0 }
  0xd4   :  { %v219_v42 = vpop.permute.xlu1 %218  ;;  %v235_v54 = vpop.permute.xlu0 %234 }
  0xd5   :  { %v271_v6 = vadd.f32 %v219_v42, %v159_v38  ;;  %v272_v7 = vadd.f32 %v219_v42, %v160_v0  ;;  %v273_v10 = vadd.f32 %v219_v42, %v161_v27 }
  0xd7   :  { %v319_v13 = vmax.f32 %v271_v6, 0.0  ;;  %v320_v11 = vmax.f32 %v272_v7, 0.0  ;;  %v321_v17 = vmax.f32 %v273_v10, 0.0  ;;  %v172_v10 = vmul.f32 %v719_v46, %v704_v35 }
  0xd8   :  { %v391_v27 = vpop.permute.xlu0 %390 }
  0xd9   :  { %v371_v28 = vpop.permute.xlu1 %370  ;;  %v431_v41 = vmul.f32 %v728_v55, %v319_v13  ;;  %v432_v23 = vmul.f32 %v728_v55, %v320_v11  ;;  %v433_v50 = vmul.f32 %v728_v55, %v321_v17  ;;  %v284_v13 = vadd.f32 %v235_v54, %v172_v10 }
  0xda   :  { %v425_v59 = vmul.f32 %v371_v28, %v313_v21  ;;  %v426_v60 = vmul.f32 %v371_v28, %v314_v51  ;;  %v427_v61 = vmul.f32 %v371_v28, %v315_v53  ;;  %v322_v51 = vmax.f32 %v274_v12, 0.0 }
  0xdc   :  { %v456_v26 = vadd.f32 %v455_v19, %v425_v59  ;;  %v477_v1 = vadd.f32 %v476_v20, %v426_v60  ;;  %v498_v2 = vadd.f32 %v497_v22, %v427_v61  ;;  %v275_v19 = vadd.f32 %v223_v16, %v163_v30 }
  0xdd   :  { %v375_v52 = vpop.permute.xlu1 %374  ;;  %v276_v20 = vadd.f32 %v223_v16, %v164_v8 }
  0xde   :  { %v428_v3 = vmul.f32 %v375_v52, %v316_v62  ;;  %v429_v4 = vmul.f32 %v375_v52, %v317_v25  ;;  %v430_v5 = vmul.f32 %v375_v52, %v318_v63  ;;  %v323_v53 = vmax.f32 %v275_v19, 0.0 }
  0xdf   :  { %v324_v31 = vmax.f32 %v276_v20, 0.0  ;;  %v174_v19 = vmul.f32 %v717_v45, %v702_v34  ;;  %v175_v20 = vmul.f32 %v719_v46, %v702_v34 }
  0xe0   :  { %v457_v9 = vadd.f32 %v456_v26, %v428_v3  ;;  %v478_v14 = vadd.f32 %v477_v1, %v429_v4  ;;  %v499_v15 = vadd.f32 %v498_v2, %v430_v5  ;;  %v171_v4 = vmul.f32 %v717_v45, %v704_v35 }
  0xe2   :  { %v227_v44 = vpop.permute.xlu1 %226  ;;  %v458_v28 = vadd.f32 %v457_v9, %v431_v41  ;;  %v479_v59 = vadd.f32 %v478_v14, %v432_v23  ;;  %v500_v32 = vadd.f32 %v499_v15, %v433_v50  ;;  %v173_v9 = vmul.f32 %v721_v47, %v704_v35 }
  0xe3   :  { %v277_v42 = vadd.f32 %v227_v44, %v165_v58  ;;  %v278_v43 = vadd.f32 %v227_v44, %v166_v29  ;;  %v279_v48 = vadd.f32 %v227_v44, %v167_v40  ;;  %v283_v8 = vadd.f32 %v235_v54, %v171_v4 }
  0xe4   :  { %v285_v11 = vadd.f32 %v235_v54, %v173_v9  ;;  %v176_v35 = vmul.f32 %v721_v47, %v702_v34 }
  0xe5   :  { %v325_v60 = vmax.f32 %v277_v42, 0.0  ;;  %v326_v25 = vmax.f32 %v278_v43, 0.0  ;;  %v327_v55 = vmax.f32 %v279_v48, 0.0 }
  0xe6   :  { %v231_v22 = vpop.permute.xlu1 %230 }
  0xe7   :  { %v280_v49 = vadd.f32 %v231_v22, %v168_v18  ;;  %v281_v21 = vadd.f32 %v231_v22, %v169_v37  ;;  %v282_v56 = vadd.f32 %v231_v22, %v170_v39  ;;  %v331_v22 = vmax.f32 %v283_v8, 0.0 }
  0xe8   :  { %v332_v37 = vmax.f32 %v284_v13, 0.0  ;;  %v333_v39 = vmax.f32 %v285_v11, 0.0 }
  0xe9   :  { %v328_v63 = vmax.f32 %v280_v49, 0.0  ;;  %v329_v0 = vmax.f32 %v281_v21, 0.0  ;;  %v330_v26 = vmax.f32 %v282_v56, 0.0 }
  0xeb   :  { %v383_v57 = vpop.permute.xlu1 %382  ;;  %v440_v14 = vmul.f32 %v391_v27, %v328_v63  ;;  %v441_v15 = vmul.f32 %v391_v27, %v329_v0  ;;  %v442_v44 = vmul.f32 %v391_v27, %v330_v26  ;;  %v612_v63 = vmov 1966171168  }
  0xec   :  { %v434_v61 = vmul.f32 %v383_v57, %v322_v51  ;;  %v435_v38 = vmul.f32 %v383_v57, %v323_v53  ;;  %v436_v62 = vmul.f32 %v383_v57, %v324_v31  ;;  %v522_v0 = vunpack.c.l.s4 %v612_v63 }
  0xee   :  { %v459_v1 = vadd.f32 %v458_v28, %v434_v61  ;;  %v480_v52 = vadd.f32 %v479_v59, %v435_v38  ;;  %v501_v2 = vadd.f32 %v500_v32, %v436_v62  ;;  %v523_v4 = vunpack.c.0.s8 %v522_v0 }
  0xef   :  { %v387_v3 = vpop.permute.xlu1 %386 }
  0xf0   :  { %v437_v5 = vmul.f32 %v387_v3, %v325_v60  ;;  %v438_v6 = vmul.f32 %v387_v3, %v326_v25  ;;  %v439_v7 = vmul.f32 %v387_v3, %v327_v55 }
  0xf2   :  { %v460_v24 = vadd.f32 %v459_v1, %v437_v5  ;;  %v481_v30 = vadd.f32 %v480_v52, %v438_v6  ;;  %v502_v16 = vadd.f32 %v501_v2, %v439_v7  ;;  %v513_v5 = vstv %s839_s2  ;;  %s585_s2 = scalar_lea.vmem %s556_s20, 48 }
  0xf3   :  { %p586_p0 = scmp.ne.s32.totalorder %s556_s20, %s585_s2  ;;  %p591_p2 = scmp.lt.s32.totalorder %s589_s21, %s585_s2 }
  0xf4   :  { %v239_v17 = vpop.permute.xlu1 %238  ;;  %v461_v18 = vadd.f32 %v460_v24, %v440_v14  ;;  %v482_v58 = vadd.f32 %v481_v30, %v441_v15  ;;  %v503_v12 = vadd.f32 %v502_v16, %v442_v44  ;;  %v526_v44 = vsub.s32 %v523_v4, %v707_v36 }
  0xf5   :  { %v286_v29 = vadd.f32 %v239_v17, %v174_v19  ;;  %v287_v40 = vadd.f32 %v239_v17, %v175_v20  ;;  %v288_v41 = vadd.f32 %v239_v17, %v176_v35  ;;  %p592_p3 = por %p591_p2, %p590_p1 }
  0xf7   :  { %v334_v48 = vmax.f32 %v286_v29, 0.0  ;;  %v335_v49 = vmax.f32 %v287_v40, 0.0  ;;  %v336_v21 = vmax.f32 %v288_v41, 0.0  ;;  %p593_p4 = pnand %p592_p3, %p586_p0 }
  0xf9   :  { %v395_v23 = vpop.permute.xlu1 %394 }
  0xfa   :  { %v443_v50 = vmul.f32 %v395_v23, %v331_v22  ;;  %v444_v42 = vmul.f32 %v395_v23, %v332_v37  ;;  %v445_v43 = vmul.f32 %v395_v23, %v333_v39 }
  0xfc   :  { %v462_v45 = vadd.f32 %v461_v18, %v443_v50  ;;  %v483_v51 = vadd.f32 %v482_v58, %v444_v42  ;;  %v504_v46 = vadd.f32 %v503_v12, %v445_v43 }
  0xfd   :  { %v399_v53 = vpop.permute.xlu1 %398 }
  0xfe   :  { %v446_v31 = vmul.f32 %v399_v53, %v334_v48  ;;  %v447_v54 = vmul.f32 %v399_v53, %v335_v49  ;;  %v448_v34 = vmul.f32 %v399_v53, %v336_v21 }
 0x100   :  { %v463_v47 = vadd.f32 %v462_v45, %v446_v31  ;;  %v484_v56 = vadd.f32 %v483_v51, %v447_v54  ;;  %v505_v57 = vadd.f32 %v504_v46, %v448_v34 }
 0x102   :  { %v464_v28 = vrot.slane %v463_v47, 4  ;;  %v485_v59 = vrot.slane %v484_v56, 4  ;;  %v506_v32 = vrot.slane %v505_v57, 4 }
 0x104   :  { %v465_v60 = vadd.f32 %v464_v28, %v463_v47  ;;  %v486_v61 = vadd.f32 %v485_v59, %v484_v56  ;;  %v507_v38 = vadd.f32 %v506_v32, %v505_v57 }
 0x106   :  { %v466_v62 = vrot.slane %v465_v60, 2  ;;  %v487_v25 = vrot.slane %v486_v61, 2  ;;  %v508_v55 = vrot.slane %v507_v38, 2 }
 0x108   :  { %v467_v27 = vadd.f32 %v466_v62, %v465_v60  ;;  %v488_v26 = vadd.f32 %v487_v25, %v486_v61  ;;  %v509_v1 = vadd.f32 %v508_v55, %v507_v38 }
 0x10a   :  { %v468_v52 = vrot.slane %v467_v27, 1  ;;  %v489_v2 = vrot.slane %v488_v26, 1  ;;  %v510_v3 = vrot.slane %v509_v1, 1 }
 0x10c   :  { %v469_v6 = vadd.f32 %v468_v52, %v467_v27  ;;  %v490_v7 = vadd.f32 %v489_v2, %v488_v26  ;;  %v511_v10 = vadd.f32 %v510_v3, %v509_v1 }
 0x10e   :  { %v514_v9 = vadd.f32 %v513_v5, %v469_v6  ;;  %v515_v14 = vadd.f32 %v513_v5, %v490_v7  ;;  %v516_v15 = vadd.f32 %v513_v5, %v511_v10 }
 0x110   :  { %v520_v24 = vcombine.low %v514_v9, %v515_v14  ;;  %v534_v16 = vrot.slane %v516_v15, %v526_v44 }
 0x112   :  { %v527_v30 = vrot.slane %v520_v24, %v526_v44 }
 0x114   :  { %v535_v8 = vcombine.low %v527_v30, %v534_v16 }
 0x116   :  { %v542_v13 = vrot.slane %v535_v8, %v526_v44 }
 0x118   :  { %548 = vst.msk [vmem:[#allocation3] sm:$0x7] %vm546_vm0, %v542_v13 }
 0x119   :  { %596 = shalt.err (!%p593_p4)
}
 0x11a   :  { %s597_s24 = scalar_lea.hbm %s840_s3, 48 }
 0x11b   :  { %p598_p5 = scmp.ne.s32.totalorder %s840_s3, %s597_s24  ;;  %p601_p6 = scmp.lt.u32.totalorder %s597_s24, %s840_s3 }
 0x11d   :  { %p603_p7 = pnand %p601_p6, %p598_p5 }
 0x11f   :  { %606 = shalt.err (!%p603_p7)
}
 0x120   :  { %558 = dma.vmem_to_hbm [thread:$0]  %s556_s20, 48, %s840_s3, [#allocation4]  }
 0x121   :  { %607 = dma.done.wait [#allocation4], 48  }
 0x122   :  { %608 = vsyncadd [#allocation4], 4294967248 }
 0x123   :  { %562 = vsyncpa [#allocation4], 1 }

</bundles_post_ra>
